<compile_context>
chip_gen: v7x
topology: tpu7x:2x2x1
jax: 0.10.0
libtpu: 0.0.40
codegen_flags: <defaults>
</compile_context>

<pallas_src>
import functools

import jax
import jax.numpy as jnp
from jax.experimental import pallas as pl
from jax.experimental.pallas import tpu as pltpu


# ---------------------------------------------------------------------------
# Fused kernel: BN(scale/shift) + ReLU + 3x3x3 conv (27 taps) + channel concat
# ---------------------------------------------------------------------------
def _fused_bn_relu_conv_cat_kernel(xp_ref, mask_ref, scale_ref, shift_ref, w_ref,
                                   out_ref, acc_ref, *, C, G, P, OFF, W2):
    kd = pl.program_id(2)          # depth tap 0..2 (innermost grid axis)

    # (C, P_ext) f32 plane at padded depth d + kd (halo-extended flat layout).
    x_pl = xp_ref[0, 0]

    # BN + ReLU in f32, then kill padded voxels, then cast to bf16 for the MXU.
    act = jnp.maximum(x_pl * scale_ref[...] + shift_ref[...], 0.0)
    act = (act * mask_ref[0]).astype(jnp.bfloat16)        # (C, P_ext)

    @pl.when(kd == 0)
    def _():
        acc_ref[...] = jnp.zeros_like(acc_ref)

    # 9 in-plane taps for this depth tap: static shifted slices of the
    # flattened plane, each a small (G,C)@(C,P) MXU matmul with f32 accumulate.
    tap_acc = jnp.zeros((G, P), jnp.float32)
    for t in range(9):
        kh, kw = t // 3, t % 3
        s = (kh - 1) * W2 + (kw - 1)                       # flat-plane shift
        lhs = act[:, OFF + s: OFF + s + P]                 # (C, P) bf16
        tap_acc = tap_acc + jnp.dot(w_ref[0, t], lhs,
                                    preferred_element_type=jnp.float32)
    acc_ref[...] += tap_acc

    # Center depth tap (kd==1) is this output depth's own x plane:
    # exact f32 passthrough into the first C output channels (fused concat).
    @pl.when(kd == 1)
    def _():
        out_ref[0, 0, :C, :] = x_pl[:, OFF: OFF + P]

    @pl.when(kd == 2)
    def _():
        out_ref[0, 0, C:, :] = acc_ref[...]


def _fused_layer_call(xp, mask, scale, shift, w_r, *, N, C, D, H, W, G):
    W2 = W + 2
    P = (H + 2) * W2
    P_ext = xp.shape[-1]
    OFF = (P_ext - P) // 2

    kernel = functools.partial(_fused_bn_relu_conv_cat_kernel,
                               C=C, G=G, P=P, OFF=OFF, W2=W2)
    return pl.pallas_call(
        kernel,
        out_shape=jax.ShapeDtypeStruct((N, D, C + G, P), jnp.float32),
        grid=(N, D, 3),
        in_specs=[
            # activation plane with halo, re-read 3x across depth taps
            pl.BlockSpec((1, 1, C, P_ext), lambda n, d, kd: (n, d + kd, 0, 0)),
            # pad-voxel mask for that plane
            pl.BlockSpec((1, 1, P_ext), lambda n, d, kd: (d + kd, 0, 0)),
            # BN scale / shift (per channel)
            pl.BlockSpec((C, 1), lambda n, d, kd: (0, 0)),
            pl.BlockSpec((C, 1), lambda n, d, kd: (0, 0)),
            # weights for this depth tap: (9, G, C) bf16
            pl.BlockSpec((1, 9, G, C), lambda n, d, kd: (kd, 0, 0, 0)),
        ],
        out_specs=pl.BlockSpec((1, 1, C + G, P), lambda n, d, kd: (n, d, 0, 0)),
        scratch_shapes=[pltpu.VMEM((G, P), jnp.float32)],
        compiler_params=pltpu.CompilerParams(
            dimension_semantics=("parallel", "parallel", "arbitrary"),
            vmem_limit_bytes=32 * 1024 * 1024,
        ),
    )(xp, mask, scale, shift, w_r)


# ---------------------------------------------------------------------------
# SingleLayer3D forward
# ---------------------------------------------------------------------------
@jax.jit
def single_layer_3d(x, gamma, beta, conv_w, eps=1e-5):
    """x: (N, C, D, H, W) f32; conv_w: (G, C, 3, 3, 3) (PyTorch OIDHW)."""
    N, C, D, H, W = x.shape
    G = conv_w.shape[0]
    W2 = W + 2
    P = (H + 2) * W2
    OFF = W + 3                       # flat halo extension (>= max tap shift)

    # --- BN training-mode batch stats: single fused pass (sum + sum of squares)
    cnt = N * D * H * W
    s1 = jnp.sum(x, axis=(0, 2, 3, 4))
    s2 = jnp.sum(x * x, axis=(0, 2, 3, 4))
    mean = s1 / cnt
    var = jnp.maximum(s2 / cnt - mean * mean, 0.0)        # biased variance
    scale = gamma * jax.lax.rsqrt(var + eps)              # (C,)
    shift = beta - mean * scale                           # (C,)

    # --- layout glue (one fused XLA copy): NCDHW -> (N, D+2, C, P_ext) zero-padded
    xt = jnp.transpose(x, (0, 2, 1, 3, 4))                            # (N, D, C, H, W)
    xp = jnp.pad(xt, ((0, 0), (1, 1), (0, 0), (1, 1), (1, 1)))        # pad D, H, W by 1
    xp = xp.reshape(N, D + 2, C, P)
    xp = jnp.pad(xp, ((0, 0), (0, 0), (0, 0), (OFF, OFF)))            # flat halo ext.

    # --- pad-voxel mask (1 = real voxel), same flattened layout (tiny array)
    m_d = (jnp.arange(D + 2) >= 1) & (jnp.arange(D + 2) <= D)
    m_h = (jnp.arange(H + 2) >= 1) & (jnp.arange(H + 2) <= H)
    m_w = (jnp.arange(W + 2) >= 1) & (jnp.arange(W + 2) <= W)
    mask = (m_d[:, None, None] & m_h[None, :, None] & m_w[None, None, :])
    mask = mask.astype(jnp.float32).reshape(D + 2, 1, P)
    mask = jnp.pad(mask, ((0, 0), (0, 0), (OFF, OFF)))                # (D+2, 1, P_ext)

    # --- weights: (G, C, kd, kh, kw) -> (kd, kh*3+kw, G, C), bf16 for the MXU
    w_r = jnp.transpose(conv_w, (2, 3, 4, 0, 1)).reshape(3, 9, G, C)
    w_r = w_r.astype(jnp.bfloat16)

    out_flat = _fused_layer_call(xp, mask, scale.reshape(C, 1), shift.reshape(C, 1),
                                 w_r, N=N, C=C, D=D, H=H, W=W, G=G)   # (N, D, C+G, P)

    # --- drop halo columns, back to NCDHW (single XLA copy)
    out = out_flat.reshape(N, D, C + G, H + 2, W + 2)[:, :, :, 1:H + 1, 1:W + 1]
    return jnp.transpose(out, (0, 2, 1, 3, 4))            # (N, C+G, D, H, W)


# ---------------------------------------------------------------------------
# Pure-JAX reference (sanity check only)
# ---------------------------------------------------------------------------
def reference(x, gamma, beta, conv_w, eps=1e-5):
    mean = jnp.mean(x, axis=(0, 2, 3, 4), keepdims=True)
    var = jnp.mean((x - mean) ** 2, axis=(0, 2, 3, 4), keepdims=True)
    xn = (x - mean) * jax.lax.rsqrt(var + eps)
    act = jnp.maximum(xn * gamma[None, :, None, None, None]
                      + beta[None, :, None, None, None], 0.0)
    conv = jax.lax.conv_general_dilated(
        act, conv_w, window_strides=(1, 1, 1),
        padding=((1, 1), (1, 1), (1, 1)),
        dimension_numbers=("NCDHW", "OIDHW", "NCDHW"),
        precision=jax.lax.Precision.HIGHEST)
    return jnp.concatenate([x, conv], axis=1)


if __name__ == "__main__":
    # Small shapes consistent with the module: nChannels=4, growthRate=8, k=3
    N, C, D, H, W = 2, 4, 8, 8, 8
    G = 8

    key = jax.random.PRNGKey(0)
    kx, kg, kb, kcw = jax.random.split(key, 4)
    x = jax.random.normal(kx, (N, C, D, H, W), dtype=jnp.float32)
    gamma = 1.0 + 0.1 * jax.random.normal(kg, (C,), dtype=jnp.float32)
    beta = 0.1 * jax.random.normal(kb, (C,), dtype=jnp.float32)
    conv_w = 0.1 * jax.random.normal(kcw, (G, C, 3, 3, 3), dtype=jnp.float32)

    out = jax.block_until_ready(single_layer_3d(x, gamma, beta, conv_w))
    assert out.shape == (N, C + G, D, H, W), out.shape

    ref = jax.block_until_ready(reference(x, gamma, beta, conv_w))
    # passthrough channels are copied in f32 by the kernel -> must match x
    assert bool(jnp.allclose(out[:, :C], x, atol=1e-6, rtol=0.0)), "passthrough mismatch"
    # conv channels use bf16 MXU operands -> loosened tolerance vs f32 reference
    err = float(jnp.max(jnp.abs(out[:, C:] - ref[:, C:])))
    assert err < 5e-2, err
    print("KERNEL_OK")
</pallas_src>

<mosaic_0001>
module attributes {stable_mosaic.version = 11 : i64} {
  func.func @_fused_bn_relu_conv_cat_kernel(%arg0: i32, %arg1: i32, %arg2: i32, %arg3: memref<1x1x4x122xf32, #tpu.memory_space<vmem>>, %arg4: memref<1x1x122xf32, #tpu.memory_space<vmem>>, %arg5: memref<4x1xf32, #tpu.memory_space<vmem>>, %arg6: memref<4x1xf32, #tpu.memory_space<vmem>>, %arg7: memref<1x9x8x4xbf16, #tpu.memory_space<vmem>>, %arg8: memref<1x1x12x100xf32, #tpu.memory_space<vmem>>, %arg9: memref<8x100xf32, #tpu.memory_space<vmem>>) attributes {dimension_semantics = [#tpu.dimension_semantics<parallel>, #tpu.dimension_semantics<parallel>, #tpu.dimension_semantics<arbitrary>], iteration_bounds = array<i64: 2, 8, 3>, scalar_prefetch = 0 : i64, scratch_operands = 1 : i64, tpu.core_type = #tpu.core_type<tc>, window_params = [{transform_indices = @transform_0, window_bounds = array<i64: 1, 1, 4, 122>}, {transform_indices = @transform_1, window_bounds = array<i64: 1, 1, 122>}, {pipeline_mode = #tpu.pipeline_mode<synchronous>, transform_indices = @transform_2, window_bounds = array<i64: 4, 1>}, {pipeline_mode = #tpu.pipeline_mode<synchronous>, transform_indices = @transform_3, window_bounds = array<i64: 4, 1>}, {transform_indices = @transform_4, window_bounds = array<i64: 1, 9, 8, 4>}, {transform_indices = @transform_5, window_bounds = array<i64: 1, 1, 12, 100>}]} {
    %c0 = arith.constant 0 : index
    %c0_0 = arith.constant 0 : index
    %c0_1 = arith.constant 0 : index
    %c0_2 = arith.constant 0 : index
    %0 = vector.load %arg3[%c0, %c0_0, %c0_1, %c0_2] : memref<1x1x4x122xf32, #tpu.memory_space<vmem>>, vector<1x1x4x122xf32>
    %1 = vector.shape_cast %0 : vector<1x1x4x122xf32> to vector<4x122xf32>
    %c0_3 = arith.constant 0 : index
    %c0_4 = arith.constant 0 : index
    %2 = vector.load %arg5[%c0_3, %c0_4] : memref<4x1xf32, #tpu.memory_space<vmem>>, vector<4x1xf32>
    %3 = vector.broadcast %2 : vector<4x1xf32> to vector<4x122xf32>
    %4 = arith.mulf %1, %3 : vector<4x122xf32>
    %c0_5 = arith.constant 0 : index
    %c0_6 = arith.constant 0 : index
    %5 = vector.load %arg6[%c0_5, %c0_6] : memref<4x1xf32, #tpu.memory_space<vmem>>, vector<4x1xf32>
    %6 = vector.broadcast %5 : vector<4x1xf32> to vector<4x122xf32>
    %7 = arith.addf %4, %6 : vector<4x122xf32>
    %cst = arith.constant 0.000000e+00 : f32
    %8 = vector.broadcast %cst : f32 to vector<4x122xf32>
    %9 = arith.maximumf %7, %8 : vector<4x122xf32>
    %c0_7 = arith.constant 0 : index
    %c0_8 = arith.constant 0 : index
    %c0_9 = arith.constant 0 : index
    %10 = vector.load %arg4[%c0_7, %c0_8, %c0_9] : memref<1x1x122xf32, #tpu.memory_space<vmem>>, vector<1x1x122xf32>
    %11 = vector.shape_cast %10 : vector<1x1x122xf32> to vector<1x122xf32>
    %12 = vector.broadcast %11 : vector<1x122xf32> to vector<4x122xf32>
    %13 = arith.mulf %9, %12 : vector<4x122xf32>
    %14 = arith.truncf %13 : vector<4x122xf32> to vector<4x122xbf16>
    %c0_i32 = arith.constant 0 : i32
    %15 = arith.cmpi eq, %arg2, %c0_i32 : i32
    %16 = arith.extui %15 : i1 to i32
    %c0_i32_10 = arith.constant 0 : i32
    %17 = arith.cmpi ne, %16, %c0_i32_10 : i32
    scf.if %17 {
      %cst_55 = arith.constant 0.000000e+00 : f32
      %73 = vector.broadcast %cst_55 : f32 to vector<8x100xf32>
      %c0_56 = arith.constant 0 : index
      %c0_57 = arith.constant 0 : index
      %74 = vector.load %arg9[%c0_56, %c0_57] : memref<8x100xf32, #tpu.memory_space<vmem>>, vector<8x100xf32>
      tpu.vector_store %arg9[%c0_56, %c0_57], %73 {strides = array<i32>} : memref<8x100xf32, #tpu.memory_space<vmem>>, vector<8x100xf32>,
    } else {
    }
    %cst_11 = arith.constant 0.000000e+00 : f32
    %18 = vector.broadcast %cst_11 : f32 to vector<8x100xf32>
    %19 = vector.extract_strided_slice %14 {offsets = [0, 0], sizes = [4, 100], strides = [1, 1]} : vector<4x122xbf16> to vector<4x100xbf16>
    %c0_12 = arith.constant 0 : index
    %c0_13 = arith.constant 0 : index
    %c0_14 = arith.constant 0 : index
    %c0_15 = arith.constant 0 : index
    %20 = vector.load %arg7[%c0_12, %c0_13, %c0_14, %c0_15] : memref<1x9x8x4xbf16, #tpu.memory_space<vmem>>, vector<1x1x8x4xbf16>
    %21 = vector.shape_cast %20 : vector<1x1x8x4xbf16> to vector<8x4xbf16>
    %cst_16 = arith.constant dense<0.000000e+00> : vector<8x100xf32>
    %22 = tpu.matmul %21, %19, %cst_16 {dimension_numbers = #tpu.dot_dimension_numbers<[1], [0], [0], [1], [0, 0, 1, 1], [], []>} : vector<8x4xbf16>, vector<4x100xbf16>, vector<8x100xf32> -> vector<8x100xf32>
    %23 = arith.addf %18, %22 : vector<8x100xf32>
    %24 = vector.extract_strided_slice %14 {offsets = [0, 1], sizes = [4, 100], strides = [1, 1]} : vector<4x122xbf16> to vector<4x100xbf16>
    %c0_17 = arith.constant 0 : index
    %c1 = arith.constant 1 : index
    %c0_18 = arith.constant 0 : index
    %c0_19 = arith.constant 0 : index
    %25 = vector.load %arg7[%c0_17, %c1, %c0_18, %c0_19] : memref<1x9x8x4xbf16, #tpu.memory_space<vmem>>, vector<1x1x8x4xbf16>
    %26 = vector.shape_cast %25 : vector<1x1x8x4xbf16> to vector<8x4xbf16>
    %cst_20 = arith.constant dense<0.000000e+00> : vector<8x100xf32>
    %27 = tpu.matmul %26, %24, %cst_20 {dimension_numbers = #tpu.dot_dimension_numbers<[1], [0], [0], [1], [0, 0, 1, 1], [], []>} : vector<8x4xbf16>, vector<4x100xbf16>, vector<8x100xf32> -> vector<8x100xf32>
    %28 = arith.addf %23, %27 : vector<8x100xf32>
    %29 = vector.extract_strided_slice %14 {offsets = [0, 2], sizes = [4, 100], strides = [1, 1]} : vector<4x122xbf16> to vector<4x100xbf16>
    %c0_21 = arith.constant 0 : index
    %c2 = arith.constant 2 : index
    %c0_22 = arith.constant 0 : index
    %c0_23 = arith.constant 0 : index
    %30 = vector.load %arg7[%c0_21, %c2, %c0_22, %c0_23] : memref<1x9x8x4xbf16, #tpu.memory_space<vmem>>, vector<1x1x8x4xbf16>
    %31 = vector.shape_cast %30 : vector<1x1x8x4xbf16> to vector<8x4xbf16>
    %cst_24 = arith.constant dense<0.000000e+00> : vector<8x100xf32>
    %32 = tpu.matmul %31, %29, %cst_24 {dimension_numbers = #tpu.dot_dimension_numbers<[1], [0], [0], [1], [0, 0, 1, 1], [], []>} : vector<8x4xbf16>, vector<4x100xbf16>, vector<8x100xf32> -> vector<8x100xf32>
    %33 = arith.addf %28, %32 : vector<8x100xf32>
    %34 = vector.extract_strided_slice %14 {offsets = [0, 10], sizes = [4, 100], strides = [1, 1]} : vector<4x122xbf16> to vector<4x100xbf16>
    %c0_25 = arith.constant 0 : index
    %c3 = arith.constant 3 : index
    %c0_26 = arith.constant 0 : index
    %c0_27 = arith.constant 0 : index
    %35 = vector.load %arg7[%c0_25, %c3, %c0_26, %c0_27] : memref<1x9x8x4xbf16, #tpu.memory_space<vmem>>, vector<1x1x8x4xbf16>
    %36 = vector.shape_cast %35 : vector<1x1x8x4xbf16> to vector<8x4xbf16>
    %cst_28 = arith.constant dense<0.000000e+00> : vector<8x100xf32>
    %37 = tpu.matmul %36, %34, %cst_28 {dimension_numbers = #tpu.dot_dimension_numbers<[1], [0], [0], [1], [0, 0, 1, 1], [], []>} : vector<8x4xbf16>, vector<4x100xbf16>, vector<8x100xf32> -> vector<8x100xf32>
    %38 = arith.addf %33, %37 : vector<8x100xf32>
    %39 = vector.extract_strided_slice %14 {offsets = [0, 11], sizes = [4, 100], strides = [1, 1]} : vector<4x122xbf16> to vector<4x100xbf16>
    %c0_29 = arith.constant 0 : index
    %c4 = arith.constant 4 : index
    %c0_30 = arith.constant 0 : index
    %c0_31 = arith.constant 0 : index
    %40 = vector.load %arg7[%c0_29, %c4, %c0_30, %c0_31] : memref<1x9x8x4xbf16, #tpu.memory_space<vmem>>, vector<1x1x8x4xbf16>
    %41 = vector.shape_cast %40 : vector<1x1x8x4xbf16> to vector<8x4xbf16>
    %cst_32 = arith.constant dense<0.000000e+00> : vector<8x100xf32>
    %42 = tpu.matmul %41, %39, %cst_32 {dimension_numbers = #tpu.dot_dimension_numbers<[1], [0], [0], [1], [0, 0, 1, 1], [], []>} : vector<8x4xbf16>, vector<4x100xbf16>, vector<8x100xf32> -> vector<8x100xf32>
    %43 = arith.addf %38, %42 : vector<8x100xf32>
    %44 = vector.extract_strided_slice %14 {offsets = [0, 12], sizes = [4, 100], strides = [1, 1]} : vector<4x122xbf16> to vector<4x100xbf16>
    %c0_33 = arith.constant 0 : index
    %c5 = arith.constant 5 : index
    %c0_34 = arith.constant 0 : index
    %c0_35 = arith.constant 0 : index
    %45 = vector.load %arg7[%c0_33, %c5, %c0_34, %c0_35] : memref<1x9x8x4xbf16, #tpu.memory_space<vmem>>, vector<1x1x8x4xbf16>
    %46 = vector.shape_cast %45 : vector<1x1x8x4xbf16> to vector<8x4xbf16>
    %cst_36 = arith.constant dense<0.000000e+00> : vector<8x100xf32>
    %47 = tpu.matmul %46, %44, %cst_36 {dimension_numbers = #tpu.dot_dimension_numbers<[1], [0], [0], [1], [0, 0, 1, 1], [], []>} : vector<8x4xbf16>, vector<4x100xbf16>, vector<8x100xf32> -> vector<8x100xf32>
    %48 = arith.addf %43, %47 : vector<8x100xf32>
    %49 = vector.extract_strided_slice %14 {offsets = [0, 20], sizes = [4, 100], strides = [1, 1]} : vector<4x122xbf16> to vector<4x100xbf16>
    %c0_37 = arith.constant 0 : index
    %c6 = arith.constant 6 : index
    %c0_38 = arith.constant 0 : index
    %c0_39 = arith.constant 0 : index
    %50 = vector.load %arg7[%c0_37, %c6, %c0_38, %c0_39] : memref<1x9x8x4xbf16, #tpu.memory_space<vmem>>, vector<1x1x8x4xbf16>
    %51 = vector.shape_cast %50 : vector<1x1x8x4xbf16> to vector<8x4xbf16>
    %cst_40 = arith.constant dense<0.000000e+00> : vector<8x100xf32>
    %52 = tpu.matmul %51, %49, %cst_40 {dimension_numbers = #tpu.dot_dimension_numbers<[1], [0], [0], [1], [0, 0, 1, 1], [], []>} : vector<8x4xbf16>, vector<4x100xbf16>, vector<8x100xf32> -> vector<8x100xf32>
    %53 = arith.addf %48, %52 : vector<8x100xf32>
    %54 = vector.extract_strided_slice %14 {offsets = [0, 21], sizes = [4, 100], strides = [1, 1]} : vector<4x122xbf16> to vector<4x100xbf16>
    %c0_41 = arith.constant 0 : index
    %c7 = arith.constant 7 : index
    %c0_42 = arith.constant 0 : index
    %c0_43 = arith.constant 0 : index
    %55 = vector.load %arg7[%c0_41, %c7, %c0_42, %c0_43] : memref<1x9x8x4xbf16, #tpu.memory_space<vmem>>, vector<1x1x8x4xbf16>
    %56 = vector.shape_cast %55 : vector<1x1x8x4xbf16> to vector<8x4xbf16>
    %cst_44 = arith.constant dense<0.000000e+00> : vector<8x100xf32>
    %57 = tpu.matmul %56, %54, %cst_44 {dimension_numbers = #tpu.dot_dimension_numbers<[1], [0], [0], [1], [0, 0, 1, 1], [], []>} : vector<8x4xbf16>, vector<4x100xbf16>, vector<8x100xf32> -> vector<8x100xf32>
    %58 = arith.addf %53, %57 : vector<8x100xf32>
    %59 = vector.extract_strided_slice %14 {offsets = [0, 22], sizes = [4, 100], strides = [1, 1]} : vector<4x122xbf16> to vector<4x100xbf16>
    %c0_45 = arith.constant 0 : index
    %c8 = arith.constant 8 : index
    %c0_46 = arith.constant 0 : index
    %c0_47 = arith.constant 0 : index
    %60 = vector.load %arg7[%c0_45, %c8, %c0_46, %c0_47] : memref<1x9x8x4xbf16, #tpu.memory_space<vmem>>, vector<1x1x8x4xbf16>
    %61 = vector.shape_cast %60 : vector<1x1x8x4xbf16> to vector<8x4xbf16>
    %cst_48 = arith.constant dense<0.000000e+00> : vector<8x100xf32>
    %62 = tpu.matmul %61, %59, %cst_48 {dimension_numbers = #tpu.dot_dimension_numbers<[1], [0], [0], [1], [0, 0, 1, 1], [], []>} : vector<8x4xbf16>, vector<4x100xbf16>, vector<8x100xf32> -> vector<8x100xf32>
    %63 = arith.addf %58, %62 : vector<8x100xf32>
    %c0_49 = arith.constant 0 : index
    %c0_50 = arith.constant 0 : index
    %64 = vector.load %arg9[%c0_49, %c0_50] : memref<8x100xf32, #tpu.memory_space<vmem>>, vector<8x100xf32>
    %65 = arith.addf %64, %63 : vector<8x100xf32>
    %c0_51 = arith.constant 0 : index
    %c0_52 = arith.constant 0 : index
    %66 = vector.load %arg9[%c0_51, %c0_52] : memref<8x100xf32, #tpu.memory_space<vmem>>, vector<8x100xf32>
    tpu.vector_store %arg9[%c0_51, %c0_52], %65 {strides = array<i32>} : memref<8x100xf32, #tpu.memory_space<vmem>>, vector<8x100xf32>,
    %c1_i32 = arith.constant 1 : i32
    %67 = arith.cmpi eq, %arg2, %c1_i32 : i32
    %68 = arith.extui %67 : i1 to i32
    %c0_i32_53 = arith.constant 0 : i32
    %69 = arith.cmpi ne, %68, %c0_i32_53 : i32
    scf.if %69 {
      %73 = vector.extract_strided_slice %1 {offsets = [0, 11], sizes = [4, 100], strides = [1, 1]} : vector<4x122xf32> to vector<4x100xf32>
      %c0_55 = arith.constant 0 : index
      %c0_56 = arith.constant 0 : index
      %c0_57 = arith.constant 0 : index
      %c0_58 = arith.constant 0 : index
      %74 = vector.load %arg8[%c0_55, %c0_56, %c0_57, %c0_58] : memref<1x1x12x100xf32, #tpu.memory_space<vmem>>, vector<1x1x4x100xf32>
      %75 = vector.shape_cast %74 : vector<1x1x4x100xf32> to vector<4x100xf32>
      %76 = vector.shape_cast %73 : vector<4x100xf32> to vector<1x1x4x100xf32>
      tpu.vector_store %arg8[%c0_55, %c0_56, %c0_57, %c0_58], %76 {strides = array<i32>} : memref<1x1x12x100xf32, #tpu.memory_space<vmem>>, vector<1x1x4x100xf32>,
    } else {
    }
    %c2_i32 = arith.constant 2 : i32
    %70 = arith.cmpi eq, %arg2, %c2_i32 : i32
    %71 = arith.extui %70 : i1 to i32
    %c0_i32_54 = arith.constant 0 : i32
    %72 = arith.cmpi ne, %71, %c0_i32_54 : i32
    scf.if %72 {
      %c0_55 = arith.constant 0 : index
      %c0_56 = arith.constant 0 : index
      %73 = vector.load %arg9[%c0_55, %c0_56] : memref<8x100xf32, #tpu.memory_space<vmem>>, vector<8x100xf32>
      %c0_57 = arith.constant 0 : index
      %c0_58 = arith.constant 0 : index
      %c4_59 = arith.constant 4 : index
      %c0_60 = arith.constant 0 : index
      %74 = vector.load %arg8[%c0_57, %c0_58, %c4_59, %c0_60] : memref<1x1x12x100xf32, #tpu.memory_space<vmem>>, vector<1x1x8x100xf32>
      %75 = vector.shape_cast %74 : vector<1x1x8x100xf32> to vector<8x100xf32>
      %76 = vector.shape_cast %73 : vector<8x100xf32> to vector<1x1x8x100xf32>
      tpu.vector_store %arg8[%c0_57, %c0_58, %c4_59, %c0_60], %76 {strides = array<i32>} : memref<1x1x12x100xf32, #tpu.memory_space<vmem>>, vector<1x1x8x100xf32>,
    } else {
    }
    return
  }
  func.func @transform_0(%arg0: i32, %arg1: i32, %arg2: i32) -> (i32, i32, i32, i32) {
    %0 = arith.addi %arg1, %arg2 : i32
    %c0_i32 = arith.constant 0 : i32
    %c0_i32_0 = arith.constant 0 : i32
    %c0_i32_1 = arith.constant 0 : i32
    return %arg0, %0, %c0_i32, %c0_i32_0 : i32, i32, i32, i32
  }
  func.func @transform_1(%arg0: i32, %arg1: i32, %arg2: i32) -> (i32, i32, i32) {
    %0 = arith.addi %arg1, %arg2 : i32
    %c0_i32 = arith.constant 0 : i32
    %c0_i32_0 = arith.constant 0 : i32
    %c0_i32_1 = arith.constant 0 : i32
    return %0, %c0_i32, %c0_i32_0 : i32, i32, i32
  }
  func.func @transform_2(%arg0: i32, %arg1: i32, %arg2: i32) -> (i32, i32) {
    %c0_i32 = arith.constant 0 : i32
    %c0_i32_0 = arith.constant 0 : i32
    %c0_i32_1 = arith.constant 0 : i32
    return %c0_i32, %c0_i32_0 : i32, i32
  }
  func.func @transform_3(%arg0: i32, %arg1: i32, %arg2: i32) -> (i32, i32) {
    %c0_i32 = arith.constant 0 : i32
    %c0_i32_0 = arith.constant 0 : i32
    %c0_i32_1 = arith.constant 0 : i32
    return %c0_i32, %c0_i32_0 : i32, i32
  }
  func.func @transform_4(%arg0: i32, %arg1: i32, %arg2: i32) -> (i32, i32, i32, i32) {
    %c0_i32 = arith.constant 0 : i32
    %c0_i32_0 = arith.constant 0 : i32
    %c0_i32_1 = arith.constant 0 : i32
    %c0_i32_2 = arith.constant 0 : i32
    return %arg2, %c0_i32, %c0_i32_0, %c0_i32_1 : i32, i32, i32, i32
  }
  func.func @transform_5(%arg0: i32, %arg1: i32, %arg2: i32) -> (i32, i32, i32, i32) {
    %c0_i32 = arith.constant 0 : i32
    %c0_i32_0 = arith.constant 0 : i32
    %c0_i32_1 = arith.constant 0 : i32
    return %arg0, %arg1, %c0_i32, %c0_i32_0 : i32, i32, i32, i32
  }
}

</mosaic_0001>

<bundles_post_ra>
// kernel: single_layer_3d.1
= control target key start
LH: loop header
LB: loop body
LE: loop exit
PB: predicated region body
PF: predicated region fallthrough
CT: control target
= control target key end

     0   :  { %s1217_s18 = smov 0   ;;  %s1219_s19 = smov 0   ;;  %s1377_s0 = inlined_call_operand.vmem [shape: f32[2,10,4,122], index: 0, kind: input, shape index: {}]   ;;  %s1378_s1 = inlined_call_operand.vmem [shape: f32[10,1,122], index: 1, kind: input, shape index: {}]   ;;  %s1379_s2 = inlined_call_operand.vmem [shape: f32[4,1], index: 2, kind: input, shape index: {}]   ;;  %s1380_s3 = inlined_call_operand.vmem [shape: f32[4,1], index: 3, kind: input, shape index: {}]   ;;  %s1381_s4 = inlined_call_operand.vmem [shape: bf16[3,9,8,4], index: 4, kind: input, shape index: {}]   ;;  %s1382_s5 = inlined_call_operand.vmem [shape: f32[2,8,12,100], index: 5, kind: output, shape index: {}]  }
   0x1   :  { %1383 = sst [smem:[#allocation3_spill]] %s1379_s2  ;;  %s1221_s20 = smov 0  }
   0x2   :  { %s1223_s21 = smov 0   ;;  %s1225_s22 = smov 0  }
   0x3   :  { %s1227_s23 = smov 0   ;;  %s1229_s24 = smov 0  }
   0x4 LB: > { %s27_s25 = sadd.s32 1, %s1160_s21  ;;  %s30_s26 = sadd.s32 1, %s1164_s22  ;;  %s1172_s24 = sphi %s1229_s24, %s15_s24   ;;  %s1168_s23 = sphi %s1227_s23, %s1390_s23   ;;  %s1164_s22 = sphi %s1225_s22, %s1389_s22   ;;  %s1160_s21 = sphi %s1223_s21, %s1388_s21   ;;  %s1156_s20 = sphi %s1221_s20, %s1387_s20   ;;  %s1152_s19 = sphi %s1219_s19, %s1386_s19   ;;  %s1148_s18 = sphi %s1217_s18, %s1385_s18  }
   0x5   : > { %p28_p0 = scmp.ge.s32.totalorder %s27_s25, 3  ;;  %p945_p1 = scmp.ge.s32.totalorder %s1172_s24, 1 }
   0x6   : > { %p239_p2 = scmp.lt.s32.totalorder %s1172_s24, 49  ;;  %s34_s27 = sadd.s32 1, %s1168_s23 }
   0x7   : > { %s1392_s25 = smov (%p28_p0, %s27_s25), 0  ;;  %s1394_s26 = smov (!%p28_p0, %s30_s26), %s1164_s22 }
   0x8   : > { %p240_p3 = pnand %p945_p1, %p239_p2  ;;  %p32_p4 = scmp.ge.s32.totalorder %s1394_s26, 8 }
   0x9   : > { %s1384_s2 = sld [smem:[#allocation3_spill]] (!%p240_p3)  ;;  %p285_p6 = scmp.lt.s32.totalorder (!%p240_p3), %s1156_s20, 1  ;;  %v1174_v1 = vmov (!%p240_p3), 0   ;;  %v322_v2 = vld [vmem:[%s1380_s3] sm:$0xf] (!%p240_p3) }
   0xa   : > { %s1396_s26 = smov (%p32_p4, %s1394_s26), 0  ;;  %s1398_s27 = smov (!%p32_p4, %s34_s27), %s1168_s23 }
   0xb   : > { %p36_p5 = scmp.ge.s32.totalorder %s1398_s27, 2  ;;  %243 = sbr.rel (%p240_p3) target bundleno = 533 (0x215), region = 40  ;;  %1117 = vset.pattern.permute.xlu0 (!%p240_p3), %v1174_v1 }
   0xc   : > { %p306_p7 = scmp.lt.s32.totalorder (!%p240_p3), %s1152_s19, 7  ;;  %p299_p8 = scmp.lt.s32.totalorder (!%p240_p3), %s1148_s18, 2 }
   0xd   : > { %s1400_s27 = smov (%p36_p5, %s1398_s27), 0  ;;  %s284_s30 = sadd.s32 (!%p240_p3), %s1148_s18, %s1152_s19 }
   0xe   : > { %p287_p9 = scmp.lt.s32.totalorder (!%p240_p3), %s284_s30, 9  ;;  %p952_p10 = scmp.ne.s32.totalorder (!%p240_p3), %s1148_s18, 0 }
   0xf   : > { %v315_v0 = vld [vmem:[%s1384_s2] sm:$0xf] (!%p240_p3) }
  0x10   : > { %318 = vperm.xlu0 (!%p240_p3), %1117, %v315_v0  }
  0x12   : > { %s1402_s20 = smov (!%p285_p6, %s1156_s20), 1  ;;  %s1404_s30 = smov (!%p287_p9, %s284_s30), 9 }
  0x13   : > { %s949_s7 = sshll.u32 %s1402_s20, 4  ;;  %s1046_s6 = smul.u32 10, %s1402_s20  ;;  %vm343_vm0 = vcmask (!%p952_p10), 818176   ;;  %v1175_v12 = vmov (!%p952_p10), 0.0  }
  0x14   : > { %s307_s8 = scalar_select %p306_p7, %s1152_s19, 7  ;;  %325 = vperm.xlu0 %1117, %v322_v2  }
  0x15   : > { %s300_s15 = scalar_select %p299_p8, %s1148_s18, 2 }
  0x16   : > { %s948_s9 = sshll.u32 %s307_s8, 1  ;;  %s290_s8 = sadd.s32 %s1046_s6, %s1404_s30  ;;  %344 = vst.msk [vmem:[#allocation2] sm:$0xff] (!%p952_p10), %vm343_vm0, %v1175_v12 }
  0x17   : > { %s310_s10 = sadd.s32 %s949_s7, %s948_s9  ;;  %s1047_s16 = smul.u32 36, %s300_s15 }
  0x18   : > { %s950_s11 = sshll.u32 %s310_s10, 3  ;;  %s946_s7 = sshll.u32 %s290_s8, 2 }
  0x19   : > { %s1275_s14 = scalar_lea.vmem %s1382_s5, %s950_s11  ;;  %s1281_s29 = scalar_lea.vmem %s1381_s4, %s1047_s16 }
  0x1a   : > { %s292_s2 = scalar_lea.vmem %s1377_s0, %s946_s7  ;;  %s297_s13 = scalar_lea.vmem %s1378_s1, %s1404_s30 }
  0x1b   : > { %v1288_v4 = vld [vmem:[%s292_s2] sm:$0xf] }
  0x1c   : > { %v951_v8 = vld [vmem:[%s297_s13] ss:$0 sm:$0xff] }
  0x8f   : > { %v319_v3 = vpop.permute.xlu0 %318 }
  0x90   : > { %v321_v5 = vmul.f32 %v319_v3, %v1288_v4 }
  0x93   : > { %v326_v6 = vpop.permute.xlu0 %325 }
  0x94   : > { %v328_v7 = vadd.f32 %v326_v6, %v321_v5  ;;  %342 = sbr.rel (%p952_p10) target bundleno = 155 (0x9b), region = 44 }
  0x96   : > { %v329_v9 = vmax.f32 %v328_v7, 0.0 }
  0x98   : > { %v337_v10 = vmul.f32 %v951_v8, %v329_v9 }
  0x9a   : > { %v338_v11 = vpack.c.bf16 %v337_v10, %v337_v10 }
  0x9b PF: > { %vm355_vm1 = vcmask 1041408   ;;  %s1176_s2 = smov 127   ;;  %v1177_v13 = vmov 0.0   ;;  %s1178_s19 = smov 118   ;;  %vm1179_vm2 = vmmov 0   ;;  %vm351_vm3 = vcmask 31744  }
  0x9c   : > { %349 = vrot.lane.b32.xlu0 %v338_v11, %s1176_s2  ;;  %992 = vmatprep.subr.bf16.mxu0 %v1177_v13  ;;  %v403_v14 = vsel %vm355_vm1, %v338_v11, 0  ;;  %v345_v15 = vld [vmem:[%s1281_s29] sm:$0xf]  ;;  %s1180_s20 = smov 126   ;;  %s1181_s15 = smov 117   ;;  %vm804_vm4 = vcmask 818176  }
  0x9d   : > { %498 = vrot.lane.b32.xlu1 %v338_v11, %s1178_s19  ;;  %998 = vmatprep.subr.bf16.mxu1 %v1177_v13  ;;  %s1182_s16 = smov 116   ;;  %s1183_s17 = smov 108   ;;  %v953_v19 = vld [vmem:[%s1281_s29 + $0x4] sm:$0xf]  ;;  %v958_v22 = vld [vmem:[%s1281_s29 + $0xc] sm:$0xf] }
  0x9e   : > { %999 = vmatpush3.bf16.msra.mxu1 %v403_v14  ;;  %994 = vmatprep.mubr.msk.bf16.mxu0 %vm1179_vm2, %v1177_v13  ;;  %s1184_s28 = smov 107   ;;  %s1185_s30 = smov 106   ;;  %v956_v27 = vld [vmem:[%s1281_s29 + $0x8] sm:$0xf]  ;;  %v962_v29 = vld [vmem:[%s1281_s29 + $0x14] sm:$0xf] }
  0x9f   : > { %1000 = vmatprep.mubr.msk.bf16.mxu1 %vm1179_vm2, %v1177_v13  ;;  %1010 = vmatprep.subr.bf16.mxu1 %v1177_v13  ;;  %v960_v33 = vld [vmem:[%s1281_s29 + $0x10] sm:$0xf]  ;;  %v966_v35 = vld [vmem:[%s1281_s29 + $0x1c] sm:$0xf]  ;;  %v964_v37 = vld [vmem:[%s1281_s29 + $0x18] sm:$0xf] }
  0xa0   : > { %447 = vrot.lane.b32.xlu0 %v338_v11, %s1180_s20  ;;  %v968_v39 = vld [vmem:[%s1281_s29 + $0x20] sm:$0xf]  ;;  %p970_p11 = scmp.ne.s32.totalorder %s1148_s18, 1 }
  0xa1   : > { %549 = vrot.lane.b32.xlu1 %v338_v11, %s1181_s15  ;;  %1001 = vmatmul.mubr.msk.bf16.vlgmr.msra.gmra.mrb[0].mxu1 %vm351_vm3, %v345_v15  ;;  %s1186_s29 = smov (!%p970_p11), 117   ;;  %vm814_vm5 = vcmask (!%p970_p11), 814080  }
  0xa2   : > { %1012 = vmatprep.mubr.msk.bf16.mxu1 %vm1179_vm2, %v1177_v13 }
  0xa4   : > { %600 = vrot.lane.b32.xlu0 %v338_v11, %s1182_s16 }
  0xa5   : > { %651 = vrot.lane.b32.xlu1 %v338_v11, %s1183_s17 }
  0xa8   : > { %702 = vrot.lane.b32.xlu0 %v338_v11, %s1184_s28 }
  0xa9   : > { %753 = vrot.lane.b32.xlu1 %v338_v11, %s1185_s30 }
  0xac   : > { %811 = vrot.lane.b32.xlu0 (!%p970_p11), %v1288_v4, %s1186_s29 }
 0x10e   : > { %v350_v16 = vpop.permute.xlu0 %349 }
 0x10f   : > { %v357_v17 = vsel %vm355_vm1, %v350_v16, 0  ;;  %v499_v18 = vpop.permute.xlu1 %498 }
 0x110   : > { %993 = vmatpush3.bf16.msra.mxu0 %v357_v17  ;;  %v504_v20 = vsel %vm355_vm1, %v499_v18, 0  ;;  %v802_v17 = vld [vmem:[#allocation2] sm:$0xff] }
 0x111   : > { %1004 = vmatprep.subr.bf16.mxu0 %v1177_v13  ;;  %1011 = vmatpush3.bf16.msra.mxu1 %v504_v20 }
 0x112   : > { %v448_v21 = vpop.permute.xlu0 %447  ;;  %1022 = vmatprep.subr.bf16.mxu1 %v1177_v13 }
 0x113   : > { %v453_v23 = vsel %vm355_vm1, %v448_v21, 0  ;;  %995 = vmatmul.mubr.msk.bf16.vlgmr.msra.gmra.mrb[0].mxu0 %vm351_vm3, %v953_v19  ;;  %v550_v24 = vpop.permute.xlu1 %549 }
 0x114   : > { %1005 = vmatpush3.bf16.msra.mxu0 %v453_v23  ;;  %1006 = vmatprep.mubr.msk.bf16.mxu0 %vm1179_vm2, %v1177_v13  ;;  %v555_v28 = vsel %vm355_vm1, %v550_v24, 0 }
 0x115   : > { %1016 = vmatprep.subr.bf16.mxu0 %v1177_v13  ;;  %1013 = vmatmul.mubr.msk.bf16.vlgmr.msra.gmra.mrb[4].mxu1 %vm351_vm3, %v958_v22 }
 0x116   : > { %v601_v25 = vpop.permute.xlu0 %600  ;;  %1024 = vmatprep.mubr.msk.bf16.mxu1 %vm1179_vm2, %v1177_v13 }
 0x117   : > { %v606_v26 = vsel %vm355_vm1, %v601_v25, 0  ;;  %v652_v32 = vpop.permute.xlu1 %651 }
 0x118   : > { %1023 = vmatpush3.bf16.msra.mxu1 %v606_v26  ;;  %v657_v34 = vsel %vm355_vm1, %v652_v32, 0 }
 0x119   : > { %1034 = vmatprep.subr.bf16.mxu1 %v1177_v13 }
 0x11a   : > { %v703_v30 = vpop.permute.xlu0 %702 }
 0x11b   : > { %1007 = vmatmul.mubr.msk.bf16.vlgmr.msra.gmra.mrb[4].mxu0 %vm351_vm3, %v956_v27  ;;  %v708_v31 = vsel %vm355_vm1, %v703_v30, 0  ;;  %v754_v36 = vpop.permute.xlu1 %753 }
 0x11c   : > { %1017 = vmatpush3.bf16.msra.mxu0 %v555_v28  ;;  %1018 = vmatprep.mubr.msk.bf16.mxu0 %vm1179_vm2, %v1177_v13  ;;  %v759_v38 = vsel %vm355_vm1, %v754_v36, 0 }
 0x11d   : > { %1028 = vmatprep.subr.bf16.mxu0 %v1177_v13  ;;  %1025 = vmatmul.mubr.msk.bf16.vlgmr.msra.gmra.mrb[8].mxu1 %vm351_vm3, %v962_v29 }
 0x11e   : > { %1035 = vmatpush3.bf16.msra.mxu1 %v708_v31  ;;  %1036 = vmatprep.mubr.msk.bf16.mxu1 %vm1179_vm2, %v1177_v13  ;;  %v812_v23 = vpop.permute.xlu0 (!%p970_p11), %811 }
 0x11f   : > { %815 = vst.msk [vmem:[%s1275_s14] sm:$0xf] (!%p970_p11), %vm814_vm5, %v812_v23 }
 0x123   : > { %1019 = vmatmul.mubr.msk.bf16.vlgmr.msra.gmra.mrb[8].mxu0 %vm351_vm3, %v960_v33 }
 0x124   : > { %1029 = vmatpush3.bf16.msra.mxu0 %v657_v34  ;;  %1030 = vmatprep.mubr.msk.bf16.mxu0 %vm1179_vm2, %v1177_v13 }
 0x125   : > { %1040 = vmatprep.subr.bf16.mxu0 %v1177_v13  ;;  %1037 = vmatmul.mubr.msk.bf16.vlgmr.msra.gmra.mrb[12].mxu1 %vm351_vm3, %v966_v35 }
 0x12b   : > { %1031 = vmatmul.mubr.msk.bf16.vlgmr.msra.gmra.mrb[12].mxu0 %vm351_vm3, %v964_v37 }
 0x12c   : > { %1041 = vmatpush3.bf16.msra.mxu0 %v759_v38  ;;  %1042 = vmatprep.mubr.msk.bf16.mxu0 %vm1179_vm2, %v1177_v13 }
 0x133   : > { %1043 = vmatmul.mubr.msk.bf16.vlgmr.msra.gmra.mrb[16].mxu0 %vm351_vm3, %v968_v39 }
 0x174   : > { %v439_v40 = vpop.f32.mrb[0].mxu1 }
 0x175   : > { %v1002_v41 = vpop.f32.mrb[1].mxu1 }
 0x176   : > { %v442_v42 = vpop.f32.mrb[2].mxu1 }
 0x177   : > { %v1003_v43 = vpop.f32.mrb[3].mxu1 }
 0x1e6   : > { %v393_v44 = vpop.f32.mrb[0].mxu0 }
 0x1e7   : > { %v996_v45 = vpop.f32.mrb[1].mxu0  ;;  %v440_v46 = vadd.f32 %v439_v40, %v393_v44 }
 0x1e8   : > { %v396_v47 = vpop.f32.mrb[2].mxu0  ;;  %v540_v48 = vpop.f32.mrb[4].mxu1 }
 0x1e9   : > { %v997_v49 = vpop.f32.mrb[3].mxu0  ;;  %v1014_v50 = vpop.f32.mrb[5].mxu1 }
 0x1ea   : > { %v543_v51 = vpop.f32.mrb[6].mxu1 }
 0x1eb   : > { %v1015_v52 = vpop.f32.mrb[7].mxu1 }
 0x1ee   : > { %v489_v53 = vpop.f32.mrb[4].mxu0 }
 0x1ef   : > { %v495_v54 = vadd.f32 %v489_v53, %v440_v46  ;;  %v1008_v55 = vpop.f32.mrb[5].mxu0 }
 0x1f0   : > { %v492_v56 = vpop.f32.mrb[6].mxu0  ;;  %v642_v57 = vpop.f32.mrb[8].mxu1 }
 0x1f1   : > { %v546_v58 = vadd.f32 %v540_v48, %v495_v54  ;;  %v1009_v59 = vpop.f32.mrb[7].mxu0  ;;  %v1026_v60 = vpop.f32.mrb[9].mxu1 }
 0x1f2   : > { %v645_v61 = vpop.f32.mrb[10].mxu1 }
 0x1f3   : > { %v1027_v62 = vpop.f32.mrb[11].mxu1 }
 0x1f6   : > { %v591_v63 = vpop.f32.mrb[8].mxu0 }
 0x1f7   : > { %v597_v0 = vadd.f32 %v591_v63, %v546_v58  ;;  %v1020_v1 = vpop.f32.mrb[9].mxu0 }
 0x1f8   : > { %v594_v2 = vpop.f32.mrb[10].mxu0  ;;  %v744_v3 = vpop.f32.mrb[12].mxu1 }
 0x1f9   : > { %v648_v5 = vadd.f32 %v642_v57, %v597_v0  ;;  %v1021_v6 = vpop.f32.mrb[11].mxu0  ;;  %v1038_v7 = vpop.f32.mrb[13].mxu1 }
 0x1fa   : > { %v747_v8 = vpop.f32.mrb[14].mxu1 }
 0x1fb   : > { %v1039_v9 = vpop.f32.mrb[15].mxu1 }
 0x1fe   : > { %v693_v10 = vpop.f32.mrb[12].mxu0 }
 0x1ff   : > { %v699_v11 = vadd.f32 %v693_v10, %v648_v5  ;;  %v1032_v12 = vpop.f32.mrb[13].mxu0 }
 0x200   : > { %v696_v13 = vpop.f32.mrb[14].mxu0 }
 0x201   : > { %v750_v14 = vadd.f32 %v744_v3, %v699_v11  ;;  %v1033_v15 = vpop.f32.mrb[15].mxu0 }
 0x205   : > { %809 = sbr.rel (%p970_p11) target bundleno = 524 (0x20c), region = 48 }
 0x206   : > { %v795_v16 = vpop.f32.mrb[16].mxu0 }
 0x207   : > { %v801_v18 = vadd.f32 %v795_v16, %v750_v14  ;;  %v1044_v19 = vpop.f32.mrb[17].mxu0 }
 0x208   : > { %v798_v20 = vpop.f32.mrb[18].mxu0 }
 0x209   : > { %v803_v21 = vadd.f32 %v802_v17, %v801_v18  ;;  %v1045_v22 = vpop.f32.mrb[19].mxu0 }
 0x20b   : > { %805 = vst.msk [vmem:[#allocation2] sm:$0xff] %vm804_vm4, %v803_v21 }
 0x20c PF: > { %p971_p12 = scmp.ne.s32.totalorder %s1148_s18, 2 }
 0x20e   : > { %819 = sbr.rel (%p971_p12) target bundleno = 533 (0x215), region = 52 }
 0x212   : > { %v820_v24 = vld [vmem:[#allocation2] sm:$0xff] (!%p971_p12) }
 0x213   : > { %821 = vst.msk [vmem:[%s1275_s14 + $0x4] sm:$0xff] (!%p971_p12), %vm804_vm4, %v820_v24 }
 0x215 PF: > { %s15_s24 = sadd.s32 1, %s1172_s24   ;;  %s1385_s18 = smov %s1160_s21 }
 0x216   : > { %p12_p13 = scmp.ge.s32.totalorder %s15_s24, 50   ;;  %s1386_s19 = smov %s1164_s22 }
 0x217   : > { %s1387_s20 = smov %s1168_s23  ;;  %s1388_s21 = smov %s1392_s25 }
 0x218   : > { %s1389_s22 = smov %s1396_s26  ;;  %s1390_s23 = smov %s1400_s27 }
 0x219   :  { %14 = sbr.rel (!%p12_p13) target bundleno = 4 (0x4), region = 96 }

</bundles_post_ra>
